<compile_context>
chip_gen: v7x
topology: tpu7x:2x2x1
jax: 0.10.0
libtpu: 0.0.40
codegen_flags: <defaults>
</compile_context>

<pallas_src>
import functools

import jax
import jax.numpy as jnp
from jax.experimental import pallas as pl
from jax.experimental.pallas import tpu as pltpu


def _round_up(x, m):
    return ((x + m - 1) // m) * m


def _cdiv(a, b):
    return -(-a // b)


def critic_kernel(a_ref, s_ref,
                  w1_ref, b1_ref,
                  w2a_ref, w2s_ref, b2_ref,
                  w3_ref, b3_ref,
                  wht_ref, bh_ref,
                  q_ref):
    cdt = w1_ref.dtype  # compute (operand) dtype: f32 or bf16

    # fc1 on state + ReLU  (f32 accumulation, bias add + ReLU in f32)
    s = jnp.dot(s_ref[...], w1_ref[...], preferred_element_type=jnp.float32)
    s = jnp.maximum(s + b1_ref[...], 0.0)

    # fc2 on concat([action, s]) + ReLU  (split-weight form of the concat)
    h = (jnp.dot(a_ref[...], w2a_ref[...], preferred_element_type=jnp.float32)
         + jnp.dot(s.astype(cdt), w2s_ref[...],
                   preferred_element_type=jnp.float32)
         + b2_ref[...])
    h = jnp.maximum(h, 0.0)

    # fc3 + ReLU
    h = jnp.dot(h.astype(cdt), w3_ref[...], preferred_element_type=jnp.float32)
    h = jnp.maximum(h + b3_ref[...], 0.0)

    # head (no activation): (tile_b, hdim) * (1, hdim) -> reduce lanes -> (tile_b, 1)
    q = jnp.sum(h * wht_ref[...], axis=-1, keepdims=True) + bh_ref[...]
    q_ref[...] = q.astype(q_ref.dtype)


@functools.partial(jax.jit,
                   static_argnames=("max_tile_b", "min_grid", "use_bf16"))
def critic_forward(action, state, params, *,
                   max_tile_b=2048, min_grid=2, use_bf16=False):
    """action: (B, k) f32, state: (B, 3k) f32 -> Q: (B, 1) f32."""
    B, k = action.shape
    hdim = params["w3"].shape[0]

    w1, b1, w2, b2, w3, b3, wh, bh = (
        params["w1"], params["b1"], params["w2"], params["b2"],
        params["w3"], params["b3"], params["wh"], params["bh"],
    )

    # Split fc2 weight into action-facing / state-facing halves so the concat
    # becomes a sum of two matmuls inside the kernel.
    w2a = w2[:k, :]
    w2s = w2[k:, :]
    # Head weight transposed to a (1, hdim) row; stays f32 (tiny).
    wh_t = wh.reshape(hdim, 1).T
    bh2 = bh.reshape(1, 1)

    # Optional operand narrowing (v6e/v7x): bf16 matmul operands, f32 accumulate.
    cdt = jnp.bfloat16 if use_bf16 else jnp.float32
    action_c = action.astype(cdt)
    state_c = state.astype(cdt)
    w1_c, w2a_c, w2s_c, w3_c = (w1.astype(cdt), w2a.astype(cdt),
                                w2s.astype(cdt), w3.astype(cdt))

    # Balanced batch tiling: minimize pad rows, keep grid >= min_grid when the
    # batch is large enough (v7x dual-TC sharding via "parallel" semantics).
    n_tiles = max(_cdiv(B, max_tile_b), min_grid)
    tile_b = _round_up(_cdiv(B, n_tiles), 8)
    n_tiles = _cdiv(B, tile_b)          # may collapse for tiny batches
    Bp = n_tiles * tile_b
    if Bp != B:
        pad = Bp - B
        # Zero pad rows propagate bias-only values through the ReLU chain:
        # finite, deterministic, sliced off below.
        action_c = jnp.pad(action_c, ((0, pad), (0, 0)))
        state_c = jnp.pad(state_c, ((0, pad), (0, 0)))
    grid = (n_tiles,)

    # Activations / output march along the batch grid; weights stay resident.
    act_spec = lambda feat: pl.BlockSpec((tile_b, feat), lambda i: (i, 0))
    resident = lambda shape: pl.BlockSpec(shape, lambda i: (0, 0))

    flops_per_row = 2 * (3 * k * k + 2 * k * hdim + hdim * hdim + hdim)
    op_bytes = jnp.dtype(cdt).itemsize
    bytes_accessed = (op_bytes * (Bp * 4 * k                     # action+state reads
                                  + 3 * k * k + 2 * k * hdim + hdim * hdim)
                      + 4 * (Bp * 1                              # Q writeback
                             + k + 2 * hdim + hdim + 1))         # f32 biases + head
    cost = pl.CostEstimate(flops=Bp * flops_per_row,
                           transcendentals=0,
                           bytes_accessed=bytes_accessed)

    out = pl.pallas_call(
        critic_kernel,
        out_shape=jax.ShapeDtypeStruct((Bp, 1), jnp.float32),
        grid=grid,
        in_specs=[
            act_spec(k),                       # action tile
            act_spec(3 * k),                   # state tile
            resident((3 * k, k)),              # w1
            resident((1, k)),                  # b1
            resident((k, hdim)),               # w2 (action half)
            resident((k, hdim)),               # w2 (state half)
            resident((1, hdim)),               # b2
            resident((hdim, hdim)),            # w3
            resident((1, hdim)),               # b3
            resident((1, hdim)),               # wh^T (f32)
            resident((1, 1)),                  # bh
        ],
        out_specs=pl.BlockSpec((tile_b, 1), lambda i: (i, 0)),
        compiler_params=pltpu.CompilerParams(
            dimension_semantics=("parallel",),   # v7x: shard batch over 2 TCs
            vmem_limit_bytes=32 * 1024 * 1024),
        cost_estimate=cost,
    )(action_c, state_c,
      w1_c, b1.reshape(1, -1),
      w2a_c, w2s_c, b2.reshape(1, -1),
      w3_c, b3.reshape(1, -1),
      wh_t, bh2)

    # Drop batch padding.
    return out[:B, :]


def init_params(key, embedding_dim, hidden_dim):
    """Deterministic PyTorch-style (uniform +/- 1/sqrt(fan_in)) init.

    Weights are stored as (in_features, out_features)."""
    def linear(key, fan_in, fan_out):
        kw, kb = jax.random.split(key)
        bound = 1.0 / jnp.sqrt(fan_in)
        w = jax.random.uniform(kw, (fan_in, fan_out), jnp.float32, -bound, bound)
        b = jax.random.uniform(kb, (fan_out,), jnp.float32, -bound, bound)
        return w, b

    k1, k2, k3, k4 = jax.random.split(key, 4)
    w1, b1 = linear(k1, 3 * embedding_dim, embedding_dim)
    w2, b2 = linear(k2, 2 * embedding_dim, hidden_dim)
    w3, b3 = linear(k3, hidden_dim, hidden_dim)
    wh, bh = linear(k4, hidden_dim, 1)
    return dict(w1=w1, b1=b1, w2=w2, b2=b2, w3=w3, b3=b3, wh=wh, bh=bh)


def critic_ref(action, state, params):
    """Pure-JAX reference for verification."""
    s = jax.nn.relu(state @ params["w1"] + params["b1"])
    c = jnp.concatenate([action, s], axis=1)
    h = jax.nn.relu(c @ params["w2"] + params["b2"])
    h = jax.nn.relu(h @ params["w3"] + params["b3"])
    return h @ params["wh"] + params["bh"]


if __name__ == "__main__":
    embedding_dim = 8
    hidden_dim = 32

    key = jax.random.PRNGKey(0)
    kp, ka, ks = jax.random.split(key, 3)
    params = init_params(kp, embedding_dim, hidden_dim)

    # Small-shape check (grid collapses to 1 step, batch padded to 8 rows).
    batch = 2
    action = jax.random.normal(ka, (batch, embedding_dim), jnp.float32)
    state = jax.random.normal(ks, (batch, 3 * embedding_dim), jnp.float32)
    q = jax.block_until_ready(critic_forward(action, state, params))
    q_ref = critic_ref(action, state, params)
    assert q.shape == (batch, 1)
    assert jnp.allclose(q, q_ref, atol=1e-5, rtol=1e-5)

    # Multi-tile check (balanced tiles: B=600 -> tile_b=304, grid=(2,), Bp=608).
    batch2 = 600
    ka2, ks2 = jax.random.split(jax.random.PRNGKey(1))
    action2 = jax.random.normal(ka2, (batch2, embedding_dim), jnp.float32)
    state2 = jax.random.normal(ks2, (batch2, 3 * embedding_dim), jnp.float32)
    q2 = jax.block_until_ready(critic_forward(action2, state2, params))
    q2_ref = critic_ref(action2, state2, params)
    assert q2.shape == (batch2, 1)
    assert jnp.allclose(q2, q2_ref, atol=1e-4, rtol=1e-4)

    # Optional bf16 operand path (v6e/v7x): f32 accumulation, looser tolerance.
    q3 = jax.block_until_ready(
        critic_forward(action2, state2, params, use_bf16=True))
    assert q3.shape == (batch2, 1)
    assert bool(jnp.all(jnp.isfinite(q3)))
    assert jnp.allclose(q3, q2_ref, atol=5e-2, rtol=5e-2)

    print("KERNEL_OK")
</pallas_src>

<mosaic_0001>
module attributes {stable_mosaic.version = 11 : i64} {
  func.func @critic_kernel(%arg0: i32, %arg1: memref<8x8xf32, #tpu.memory_space<vmem>>, %arg2: memref<8x24xf32, #tpu.memory_space<vmem>>, %arg3: memref<24x8xf32, #tpu.memory_space<vmem>>, %arg4: memref<1x8xf32, #tpu.memory_space<vmem>>, %arg5: memref<8x32xf32, #tpu.memory_space<vmem>>, %arg6: memref<8x32xf32, #tpu.memory_space<vmem>>, %arg7: memref<1x32xf32, #tpu.memory_space<vmem>>, %arg8: memref<32x32xf32, #tpu.memory_space<vmem>>, %arg9: memref<1x32xf32, #tpu.memory_space<vmem>>, %arg10: memref<1x32xf32, #tpu.memory_space<vmem>>, %arg11: memref<1x1xf32, #tpu.memory_space<vmem>>, %arg12: memref<8x1xf32, #tpu.memory_space<vmem>>) attributes {dimension_semantics = [#tpu.dimension_semantics<parallel>], iteration_bounds = array<i64: 1>, scalar_prefetch = 0 : i64, scratch_operands = 0 : i64, tpu.core_type = #tpu.core_type<tc>, window_params = [{transform_indices = @transform_0, window_bounds = array<i64: 8, 8>}, {transform_indices = @transform_1, window_bounds = array<i64: 8, 24>}, {pipeline_mode = #tpu.pipeline_mode<synchronous>, transform_indices = @transform_2, window_bounds = array<i64: 24, 8>}, {pipeline_mode = #tpu.pipeline_mode<synchronous>, transform_indices = @transform_3, window_bounds = array<i64: 1, 8>}, {pipeline_mode = #tpu.pipeline_mode<synchronous>, transform_indices = @transform_4, window_bounds = array<i64: 8, 32>}, {pipeline_mode = #tpu.pipeline_mode<synchronous>, transform_indices = @transform_5, window_bounds = array<i64: 8, 32>}, {pipeline_mode = #tpu.pipeline_mode<synchronous>, transform_indices = @transform_6, window_bounds = array<i64: 1, 32>}, {pipeline_mode = #tpu.pipeline_mode<synchronous>, transform_indices = @transform_7, window_bounds = array<i64: 32, 32>}, {pipeline_mode = #tpu.pipeline_mode<synchronous>, transform_indices = @transform_8, window_bounds = array<i64: 1, 32>}, {pipeline_mode = #tpu.pipeline_mode<synchronous>, transform_indices = @transform_9, window_bounds = array<i64: 1, 32>}, {pipeline_mode = #tpu.pipeline_mode<synchronous>, transform_indices = @transform_10, window_bounds = array<i64: 1, 1>}, {transform_indices = @transform_11, window_bounds = array<i64: 8, 1>}]} {
    %c0 = arith.constant 0 : index
    %c0_0 = arith.constant 0 : index
    %0 = vector.load %arg2[%c0, %c0_0] : memref<8x24xf32, #tpu.memory_space<vmem>>, vector<8x24xf32>
    %c0_1 = arith.constant 0 : index
    %c0_2 = arith.constant 0 : index
    %1 = vector.load %arg3[%c0_1, %c0_2] : memref<24x8xf32, #tpu.memory_space<vmem>>, vector<24x8xf32>
    %cst = arith.constant dense<0.000000e+00> : vector<8x8xf32>
    %2 = tpu.matmul %0, %1, %cst {dimension_numbers = #tpu.dot_dimension_numbers<[1], [0], [0], [1], [0, 0, 1, 1], [], []>} : vector<8x24xf32>, vector<24x8xf32>, vector<8x8xf32> -> vector<8x8xf32>
    %c0_3 = arith.constant 0 : index
    %c0_4 = arith.constant 0 : index
    %3 = vector.load %arg4[%c0_3, %c0_4] : memref<1x8xf32, #tpu.memory_space<vmem>>, vector<1x8xf32>
    %4 = vector.broadcast %3 : vector<1x8xf32> to vector<8x8xf32>
    %5 = arith.addf %2, %4 : vector<8x8xf32>
    %cst_5 = arith.constant 0.000000e+00 : f32
    %6 = vector.broadcast %cst_5 : f32 to vector<8x8xf32>
    %7 = arith.maximumf %5, %6 : vector<8x8xf32>
    %c0_6 = arith.constant 0 : index
    %c0_7 = arith.constant 0 : index
    %8 = vector.load %arg1[%c0_6, %c0_7] : memref<8x8xf32, #tpu.memory_space<vmem>>, vector<8x8xf32>
    %c0_8 = arith.constant 0 : index
    %c0_9 = arith.constant 0 : index
    %9 = vector.load %arg5[%c0_8, %c0_9] : memref<8x32xf32, #tpu.memory_space<vmem>>, vector<8x32xf32>
    %cst_10 = arith.constant dense<0.000000e+00> : vector<8x32xf32>
    %10 = tpu.matmul %8, %9, %cst_10 {dimension_numbers = #tpu.dot_dimension_numbers<[1], [0], [0], [1], [0, 0, 1, 1], [], []>} : vector<8x8xf32>, vector<8x32xf32>, vector<8x32xf32> -> vector<8x32xf32>
    %c0_11 = arith.constant 0 : index
    %c0_12 = arith.constant 0 : index
    %11 = vector.load %arg6[%c0_11, %c0_12] : memref<8x32xf32, #tpu.memory_space<vmem>>, vector<8x32xf32>
    %cst_13 = arith.constant dense<0.000000e+00> : vector<8x32xf32>
    %12 = tpu.matmul %7, %11, %cst_13 {dimension_numbers = #tpu.dot_dimension_numbers<[1], [0], [0], [1], [0, 0, 1, 1], [], []>} : vector<8x8xf32>, vector<8x32xf32>, vector<8x32xf32> -> vector<8x32xf32>
    %13 = arith.addf %10, %12 : vector<8x32xf32>
    %c0_14 = arith.constant 0 : index
    %c0_15 = arith.constant 0 : index
    %14 = vector.load %arg7[%c0_14, %c0_15] : memref<1x32xf32, #tpu.memory_space<vmem>>, vector<1x32xf32>
    %15 = vector.broadcast %14 : vector<1x32xf32> to vector<8x32xf32>
    %16 = arith.addf %13, %15 : vector<8x32xf32>
    %cst_16 = arith.constant 0.000000e+00 : f32
    %17 = vector.broadcast %cst_16 : f32 to vector<8x32xf32>
    %18 = arith.maximumf %16, %17 : vector<8x32xf32>
    %c0_17 = arith.constant 0 : index
    %c0_18 = arith.constant 0 : index
    %19 = vector.load %arg8[%c0_17, %c0_18] : memref<32x32xf32, #tpu.memory_space<vmem>>, vector<32x32xf32>
    %cst_19 = arith.constant dense<0.000000e+00> : vector<8x32xf32>
    %20 = tpu.matmul %18, %19, %cst_19 {dimension_numbers = #tpu.dot_dimension_numbers<[1], [0], [0], [1], [0, 0, 1, 1], [], []>} : vector<8x32xf32>, vector<32x32xf32>, vector<8x32xf32> -> vector<8x32xf32>
    %c0_20 = arith.constant 0 : index
    %c0_21 = arith.constant 0 : index
    %21 = vector.load %arg9[%c0_20, %c0_21] : memref<1x32xf32, #tpu.memory_space<vmem>>, vector<1x32xf32>
    %22 = vector.broadcast %21 : vector<1x32xf32> to vector<8x32xf32>
    %23 = arith.addf %20, %22 : vector<8x32xf32>
    %cst_22 = arith.constant 0.000000e+00 : f32
    %24 = vector.broadcast %cst_22 : f32 to vector<8x32xf32>
    %25 = arith.maximumf %23, %24 : vector<8x32xf32>
    %c0_23 = arith.constant 0 : index
    %c0_24 = arith.constant 0 : index
    %26 = vector.load %arg10[%c0_23, %c0_24] : memref<1x32xf32, #tpu.memory_space<vmem>>, vector<1x32xf32>
    %27 = vector.broadcast %26 : vector<1x32xf32> to vector<8x32xf32>
    %28 = arith.mulf %25, %27 : vector<8x32xf32>
    %cst_25 = arith.constant dense<0.000000e+00> : vector<8xf32>
    %29 = vector.multi_reduction <add>, %28, %cst_25 [1] : vector<8x32xf32> to vector<8xf32>
    %30 = vector.shape_cast %29 : vector<8xf32> to vector<8x1xf32>
    %c0_26 = arith.constant 0 : index
    %c0_27 = arith.constant 0 : index
    %31 = vector.load %arg11[%c0_26, %c0_27] : memref<1x1xf32, #tpu.memory_space<vmem>>, vector<1x1xf32>
    %32 = vector.broadcast %31 : vector<1x1xf32> to vector<8x1xf32>
    %33 = arith.addf %30, %32 : vector<8x1xf32>
    %c0_28 = arith.constant 0 : index
    %c0_29 = arith.constant 0 : index
    %34 = vector.load %arg12[%c0_28, %c0_29] : memref<8x1xf32, #tpu.memory_space<vmem>>, vector<8x1xf32>
    tpu.vector_store %arg12[%c0_28, %c0_29], %33 {strides = array<i32>} : memref<8x1xf32, #tpu.memory_space<vmem>>, vector<8x1xf32>,
    return
  }
  func.func @transform_0(%arg0: i32) -> (i32, i32) {
    %c0_i32 = arith.constant 0 : i32
    %c0_i32_0 = arith.constant 0 : i32
    return %arg0, %c0_i32 : i32, i32
  }
  func.func @transform_1(%arg0: i32) -> (i32, i32) {
    %c0_i32 = arith.constant 0 : i32
    %c0_i32_0 = arith.constant 0 : i32
    return %arg0, %c0_i32 : i32, i32
  }
  func.func @transform_2(%arg0: i32) -> (i32, i32) {
    %c0_i32 = arith.constant 0 : i32
    %c0_i32_0 = arith.constant 0 : i32
    %c0_i32_1 = arith.constant 0 : i32
    return %c0_i32, %c0_i32_0 : i32, i32
  }
  func.func @transform_3(%arg0: i32) -> (i32, i32) {
    %c0_i32 = arith.constant 0 : i32
    %c0_i32_0 = arith.constant 0 : i32
    %c0_i32_1 = arith.constant 0 : i32
    return %c0_i32, %c0_i32_0 : i32, i32
  }
  func.func @transform_4(%arg0: i32) -> (i32, i32) {
    %c0_i32 = arith.constant 0 : i32
    %c0_i32_0 = arith.constant 0 : i32
    %c0_i32_1 = arith.constant 0 : i32
    return %c0_i32, %c0_i32_0 : i32, i32
  }
  func.func @transform_5(%arg0: i32) -> (i32, i32) {
    %c0_i32 = arith.constant 0 : i32
    %c0_i32_0 = arith.constant 0 : i32
    %c0_i32_1 = arith.constant 0 : i32
    return %c0_i32, %c0_i32_0 : i32, i32
  }
  func.func @transform_6(%arg0: i32) -> (i32, i32) {
    %c0_i32 = arith.constant 0 : i32
    %c0_i32_0 = arith.constant 0 : i32
    %c0_i32_1 = arith.constant 0 : i32
    return %c0_i32, %c0_i32_0 : i32, i32
  }
  func.func @transform_7(%arg0: i32) -> (i32, i32) {
    %c0_i32 = arith.constant 0 : i32
    %c0_i32_0 = arith.constant 0 : i32
    %c0_i32_1 = arith.constant 0 : i32
    return %c0_i32, %c0_i32_0 : i32, i32
  }
  func.func @transform_8(%arg0: i32) -> (i32, i32) {
    %c0_i32 = arith.constant 0 : i32
    %c0_i32_0 = arith.constant 0 : i32
    %c0_i32_1 = arith.constant 0 : i32
    return %c0_i32, %c0_i32_0 : i32, i32
  }
  func.func @transform_9(%arg0: i32) -> (i32, i32) {
    %c0_i32 = arith.constant 0 : i32
    %c0_i32_0 = arith.constant 0 : i32
    %c0_i32_1 = arith.constant 0 : i32
    return %c0_i32, %c0_i32_0 : i32, i32
  }
  func.func @transform_10(%arg0: i32) -> (i32, i32) {
    %c0_i32 = arith.constant 0 : i32
    %c0_i32_0 = arith.constant 0 : i32
    %c0_i32_1 = arith.constant 0 : i32
    return %c0_i32, %c0_i32_0 : i32, i32
  }
  func.func @transform_11(%arg0: i32) -> (i32, i32) {
    %c0_i32 = arith.constant 0 : i32
    %c0_i32_0 = arith.constant 0 : i32
    return %arg0, %c0_i32 : i32, i32
  }
}

</mosaic_0001>

<bundles_post_ra>
// kernel: critic_forward.1
= control target key start
LH: loop header
LB: loop body
LE: loop exit
PB: predicated region body
PF: predicated region fallthrough
CT: control target
= control target key end

     0   :  { %v460_v0 = vmov 0.0|0.0   ;;  %vm461_vm0 = vmmov 0   ;;  %v462_v3 = vmov 0.0   ;;  %vm51_vm1 = vcmask 195584   ;;  %s578_s2 = inlined_call_operand.vmem [shape: f32[24,8], index: 2, kind: input, shape index: {}]   ;;  %s579_s1 = inlined_call_operand.vmem [shape: f32[8,24], index: 1, kind: input, shape index: {}]   ;;  %s580_s5 = inlined_call_operand.vmem [shape: f32[8,32], index: 5, kind: input, shape index: {}]   ;;  %s581_s3 = inlined_call_operand.vmem [shape: f32[1,8], index: 3, kind: input, shape index: {}]   ;;  %s582_s4 = inlined_call_operand.vmem [shape: f32[8,32], index: 4, kind: input, shape index: {}]   ;;  %s583_s0 = inlined_call_operand.vmem [shape: f32[8,8], index: 0, kind: input, shape index: {}]   ;;  %s584_s7 = inlined_call_operand.vmem [shape: f32[32,32], index: 7, kind: input, shape index: {}]   ;;  %s585_s6 = inlined_call_operand.vmem [shape: f32[1,32], index: 6, kind: input, shape index: {}]   ;;  %s586_s10 = inlined_call_operand.<no memory space> [shape: f32[1,1], index: 10, kind: input, shape index: {}]   ;;  %s587_s8 = inlined_call_operand.vmem [shape: f32[1,32], index: 8, kind: input, shape index: {}]   ;;  %s588_s9 = inlined_call_operand.vmem [shape: f32[1,32], index: 9, kind: input, shape index: {}]   ;;  %s589_s11 = inlined_call_operand.vmem [shape: f32[8,1], index: 11, kind: output, shape index: {}]  }
   0x1   :  { %448 = vmatprep.subr.bf16.mxu0 %v460_v0  ;;  %v41_v1 = vld [vmem:[%s578_s2] sm:$0xff]  ;;  %v42_v2 = vld [vmem:[%s578_s2 + $0x8] sm:$0xff]  ;;  %424 = vmatprep.mubr.msk.f32.mxu0 %vm461_vm0, %v462_v3  ;;  %v43_v5 = vld [vmem:[%s578_s2 + $0x10] sm:$0xff]  ;;  %vm129_vm2 = vcmask 64512   ;;  %vm296_vm3 = vcmask 261120   ;;  %v16_v29 = vstv %s586_s10  ;;  %vm390_vm4 = vcmask 7168  }
   0x2   :  { %v449_v4 = vpack.c.bf16 %v42_v2, %v41_v1  ;;  %427 = vmatprep.subr.mxu1 %v462_v3  ;;  %429 = vmatprep.mubr.msk.f32.mxu1 %vm461_vm0, %v462_v3  ;;  %v40_v6 = vld [vmem:[%s579_s1] sm:$0xff]  ;;  %v286_v16 = vld [vmem:[%s584_s7 + $0x8] sm:$0xff]  ;;  %v287_v18 = vld [vmem:[%s584_s7 + $0x10] sm:$0xff]  ;;  %17 = vst [vmem:[#allocation2] sm:$0x1] %v16_v29 }
   0x3   :  { %v128_v7 = vld [vmem:[%s580_s5] sm:$0xff]  ;;  %v288_v19 = vld [vmem:[%s584_s7 + $0x18] sm:$0xff] }
   0x4   :  { %450 = vmatpush3.bf16.msra.mxu0 %v449_v4  ;;  %428 = vmatpush3.msra.mxu1 %v128_v7  ;;  %v396_v8 = vld [vmem:[%s581_s3] ss:$0 sm:$0xff]  ;;  %v455_v20 = vpack.c.bf16 %v288_v19, %v287_v18 }
   0x5   :  { %422 = vmatprep.subr.mxu0 %v462_v3  ;;  %432 = vmatprep.subr.mxu1 %v462_v3  ;;  %v127_v13 = vld [vmem:[%s582_s4] sm:$0xff] }
   0x6   :  { %v126_v14 = vld [vmem:[%s583_s0] sm:$0xff] }
   0x7   :  { %v285_v15 = vld [vmem:[%s584_s7] sm:$0xff] }
   0x8   :  { %423 = vmatpush3.msra.mxu0 %v43_v5  ;;  %v452_v17 = vpack.c.bf16 %v286_v16, %v285_v15  ;;  %v400_v24 = vld [vmem:[%s585_s6] ss:$0 sm:$0xff] }
   0x9   :  { %425 = vmatmul.mubr.msk.f32.vlgmr.msra.gmra.mrb[0].mxu0 %vm51_vm1, %v40_v6  ;;  %451 = vmatprep.subr.bf16.mxu0 %v460_v0  ;;  %v401_v30 = vld [vmem:[%s587_s8] ss:$0 sm:$0xff] }
   0xa   :  { %445 = vmatprep.mubr.msk.f32.mxu0 %vm461_vm0, %v462_v3  ;;  %453 = vmatpush3.bf16.msra.mxu0 %v452_v17  ;;  %v403_v34 = vld [vmem:[%s588_s9] ss:$0 sm:$0xff] }
   0xb   :  { %454 = vmatprep.subr.bf16.mxu0 %v460_v0  ;;  %v404_v38 = vld [vmem:[#allocation2] ss:$0 sm:$0xff] }
   0xe   :  { %456 = vmatpush3.bf16.msra.mxu0 %v455_v20 }
  0xdc   :  { %v121_v9 = vpop.f32.mrb[0].mxu0 }
  0xdd   :  { %v122_v10 = vadd.f32 %v396_v8, %v121_v9  ;;  %v426_v11 = vpop.f32.mrb[1].mxu0 }
  0xdf   :  { %v125_v12 = vmax.f32 %v122_v10, 0.0 }
  0xe1   :  { %430 = vmatmul.mubr.msk.f32.vlgmr.msra.gmra.mrb[0].mxu1 %vm129_vm2, %v125_v12 }
  0xe2   :  { %433 = vmatpush3.msra.mxu1 %v127_v13  ;;  %434 = vmatprep.mubr.msk.f32.mxu1 %vm461_vm0, %v462_v3 }
  0xe5   :  { %435 = vmatmul.mubr.msk.f32.vlgmr.msra.gmra.mrb[2].mxu1 %vm129_vm2, %v126_v14 }
 0x1b4   :  { %v199_v21 = vpop.f32.mrb[0].mxu1 }
 0x1b5   :  { %v431_v22 = vpop.f32.mrb[1].mxu1 }
 0x1b8   :  { %v272_v23 = vpop.f32.mrb[2].mxu1 }
 0x1b9   :  { %v273_v25 = vadd.f32 %v272_v23, %v199_v21  ;;  %v436_v26 = vpop.f32.mrb[3].mxu1 }
 0x1bb   :  { %v283_v27 = vadd.f32 %v400_v24, %v273_v25 }
 0x1bd   :  { %v284_v28 = vmax.f32 %v283_v27, 0.0 }
 0x1bf   :  { %446 = vmatmul.mubr.msk.f32.vlgmr.msra.gmra.mrb[2].mxu0 %vm296_vm3, %v284_v28 }
 0x292   :  { %v366_v31 = vpop.f32.mrb[2].mxu0 }
 0x293   :  { %v367_v32 = vadd.f32 %v401_v30, %v366_v31  ;;  %v447_v33 = vpop.f32.mrb[3].mxu0 }
 0x295   :  { %v370_v35 = vmax.f32 %v367_v32, 0.0 }
 0x297   :  { %v378_v36 = vmul.f32 %v403_v34, %v370_v35 }
 0x299   :  { %v379_v37 = vsel %vm296_vm3, %v378_v36, 0.0 }
 0x29a   :  { %380 = vadd.xlane.f32.xlu0 %v379_v37 }
 0x327   :  { %v381_v39 = vpop.xlane.xlu0 %380 }
 0x328   :  { %v389_v40 = vadd.f32 %v404_v38, %v381_v39 }
 0x32a   :  { %391 = vst.msk [vmem:[%s589_s11] sm:$0xff] %vm390_vm4, %v389_v40 }

</bundles_post_ra>
